<compile_context>
chip_gen: v6e
topology: v6e:2x2x1
jax: 0.10.0
libtpu: 0.0.40
codegen_flags: <defaults>
</compile_context>

<pallas_src>
import numpy as np
import jax
import jax.numpy as jnp
from jax.experimental import pallas as pl
from jax.experimental.pallas import tpu as pltpu

LANE = 128     # TPU lane width
SUBLANE = 8    # f32 sublane packing


def _round_up(x, m):
    return (x + m - 1) // m * m


def _dft_matrices(n, f, fp, np_pad):
    """Fused, zero-padded real-DFT matrices (exact rfft / irfft as matmuls).

    fcat : (n, 2*fp)      columns [0:f]      = cos(2*pi*f*n/N)      -> Re(rfft)
                          columns [fp:fp+f]  = -sin(2*pi*f*n/N)     -> Im(rfft)
    icat : (2*fp, np_pad) rows    [0:f]      = (w_f/N) * cos(...)   (irfft, real part)
                          rows    [fp:fp+f]  = -(w_f/N) * sin(...)  (irfft, imag part;
                          DC/Nyquist rows are zero because sin vanishes, matching torch
                          dropping the imaginary DC/Nyquist components)
    """
    nn = np.arange(n)[:, None]
    ff = np.arange(f)[None, :]
    ang = 2.0 * np.pi * nn * ff / n                       # (n, f)

    fcat = np.zeros((n, 2 * fp), np.float32)
    fcat[:, :f] = np.cos(ang)
    fcat[:, fp:fp + f] = -np.sin(ang)

    w = np.full((f,), 2.0)
    w[0] = 1.0
    if n % 2 == 0:
        w[-1] = 1.0
    icat = np.zeros((2 * fp, np_pad), np.float32)
    icat[:f, :n] = (w[:, None] / n) * np.cos(ang.T)
    icat[fp:fp + f, :n] = -(w[:, None] / n) * np.sin(ang.T)
    return fcat, icat


def hyper_fourier_kernel(x_ref, fcat_ref, icat_ref, wr_ref, wi_ref, o_ref):
    """One row-tile: forward real-DFT, complex modulation, inverse real-DFT.

    x_ref   : (TM, N)      bf16 input rows
    fcat    : (N, 2*FP)    bf16 fused forward DFT matrix (resident)
    icat    : (2*FP, NP)   bf16 fused inverse DFT matrix (resident)
    wr/wi   : (TM, FP)     f32 per-row complex weights (resident, batch-periodic)
    o_ref   : (TM, NP)     f32 lane-dense padded output
    """
    fp = wr_ref.shape[1]

    # rfft as ONE fused MXU matmul (bf16 in, f32 accumulate):  X = [Xr | Xi]
    xspec = jnp.dot(x_ref[...], fcat_ref[...], preferred_element_type=jnp.float32)
    xr = xspec[:, :fp]
    xi = xspec[:, fp:]

    # Complex modulation in f32 on the VPU (v5e-friendly: no bf16 elementwise).
    wr = wr_ref[...]
    wi = wi_ref[...]
    mr = xr * wr - xi * wi
    mi = xr * wi + xi * wr

    # irfft as ONE fused MXU matmul; cast to bf16 only at the MXU boundary.
    mcat = jnp.concatenate([mr, mi], axis=-1).astype(jnp.bfloat16)   # (TM, 2*FP)
    y = jnp.dot(mcat, icat_ref[...], preferred_element_type=jnp.float32)
    o_ref[...] = y.astype(o_ref.dtype)


def hyper_fourier_forward(x, freq_weights, phase_shift, *, max_rows_per_tile=2048):
    """x: (B, D, N); freq_weights: (D, D); phase_shift: (D,).

    NOTE: the PyTorch module's broadcast (x_fft * complex(freq_weights, phase_shift))
    only type-checks when input_dim == output_dim == N//2 + 1; asserted here.
    """
    B, D, N = x.shape
    F = N // 2 + 1
    assert freq_weights.shape == (D, D) and phase_shift.shape == (D,)
    assert F == D, "HyperFourierLayer requires input_dim == output_dim == N//2 + 1"

    FP = _round_up(F, LANE)          # lane-dense frequency axis
    NP = _round_up(N, LANE)          # lane-dense output axis (trimmed below)
    DP = _round_up(D, SUBLANE)       # sublane-aligned per-batch row count

    fcat_np, icat_np = _dft_matrices(N, F, FP, NP)
    fcat = jnp.asarray(fcat_np, dtype=jnp.bfloat16)
    icat = jnp.asarray(icat_np, dtype=jnp.bfloat16)

    # Complex weight (Re, Im), zero-padded to (DP, FP); stays f32 for the VPU modulation.
    wr_pad = jnp.zeros((DP, FP), jnp.float32).at[:D, :F].set(
        freq_weights.astype(jnp.float32))
    wi_pad = jnp.zeros((DP, FP), jnp.float32).at[:D, :F].set(
        jnp.broadcast_to(phase_shift.astype(jnp.float32)[None, :], (D, F)))

    # Pad D -> DP with zero rows, flatten to rows, cast MXU input to bf16.
    x_pad = jnp.zeros((B, DP, N), x.dtype).at[:, :D, :].set(x)
    x2 = x_pad.reshape(B * DP, N).astype(jnp.bfloat16)
    M_pad = B * DP

    # ---- tile sizing: TM = TB * DP rows, TB a divisor of B, sized for VMEM ----
    try:
        vmem_cap = int(pltpu.get_tpu_info().vmem_capacity_bytes)
    except Exception:
        vmem_cap = 64 * 1024 * 1024      # v7x has the smallest per-TensorCore VMEM
    tile_budget = vmem_cap // 4          # headroom for double-buffering + spills

    def _tile_bytes(tm):
        dbl = 2  # double-buffered pipelined blocks
        return (tm * N * 2 * dbl                          # x tile (bf16)
                + tm * NP * 4 * dbl                       # out tile (f32)
                + 2 * tm * FP * 4                         # wr/wi (resident, f32)
                + (N * 2 * FP + 2 * FP * NP) * 2 * dbl    # DFT matrices (bf16)
                + tm * (2 * FP * 4 * 2 + 2 * FP * 2 + NP * 4))  # live intermediates

    tb_cap = max(1, min(B, max_rows_per_tile // DP))
    TB = 1
    for cand in range(tb_cap, 0, -1):
        if B % cand == 0 and _tile_bytes(cand * DP) <= tile_budget:
            TB = cand
            break
    TM = TB * DP
    grid = (M_pad // TM,)

    # Weight tile reused (resident) for EVERY grid step -> no B x HBM duplication.
    wr_t = jnp.tile(wr_pad, (TB, 1))     # (TM, FP)
    wi_t = jnp.tile(wi_pad, (TB, 1))     # (TM, FP)

    cost = pl.CostEstimate(
        flops=2 * M_pad * 2 * FP * (N + NP),
        transcendentals=0,
        bytes_accessed=(x2.size * 2 + M_pad * NP * 4
                        + 2 * TM * FP * 4 + fcat.size * 2 + icat.size * 2),
    )

    out2 = pl.pallas_call(
        hyper_fourier_kernel,
        out_shape=jax.ShapeDtypeStruct((M_pad, NP), x.dtype),
        grid=grid,
        in_specs=[
            pl.BlockSpec((TM, N), lambda i: (i, 0)),          # x rows (streamed)
            pl.BlockSpec((N, 2 * FP), lambda i: (0, 0)),      # fwd DFT (resident)
            pl.BlockSpec((2 * FP, NP), lambda i: (0, 0)),     # inv DFT (resident)
            pl.BlockSpec((TM, FP), lambda i: (0, 0)),         # wr tile (resident)
            pl.BlockSpec((TM, FP), lambda i: (0, 0)),         # wi tile (resident)
        ],
        out_specs=pl.BlockSpec((TM, NP), lambda i: (i, 0)),
        compiler_params=pltpu.CompilerParams(
            dimension_semantics=("parallel",),                # v7x: shard rows across 2 TCs
            vmem_limit_bytes=int(min(vmem_cap * 3 // 4, 96 * 1024 * 1024)),
        ),
        cost_estimate=cost,
    )(x2, fcat, icat, wr_t, wi_t)

    # Trim the lane-density / sublane-alignment padding (wrapper glue, not hot path).
    return out2.reshape(B, DP, NP)[:, :D, :N]


def reference_forward(x, freq_weights, phase_shift):
    """Plain-JAX reference with identical PyTorch semantics."""
    x_fft = jnp.fft.rfft(x, axis=-1)                                # (B, D, F)
    w = freq_weights + 1j * phase_shift[None, :]                    # (D, F)
    return jnp.fft.irfft(x_fft * w[None], n=x.shape[-1], axis=-1)   # (B, D, N)


if __name__ == "__main__":
    # Small shapes consistent with the module's broadcasting constraint:
    # input_dim = output_dim = D = 9, signal length N = 16 so that N//2 + 1 == D.
    B, D, N = 4, 9, 16

    key = jax.random.PRNGKey(0)
    kx, kw, kp = jax.random.split(key, 3)
    x = jax.random.normal(kx, (B, D, N), dtype=jnp.float32)
    freq_weights = jax.random.normal(kw, (D, D), dtype=jnp.float32)   # (output_dim, input_dim)
    phase_shift = jax.random.normal(kp, (D,), dtype=jnp.float32)      # (output_dim,)

    ref = jax.block_until_ready(reference_forward(x, freq_weights, phase_shift))

    # Default tiling (single grid step at this toy size).
    out = jax.block_until_ready(hyper_fourier_forward(x, freq_weights, phase_shift))
    # bf16 MXU inputs with f32 accumulation -> 5e-2 tolerance.
    np.testing.assert_allclose(np.asarray(out), np.asarray(ref), rtol=5e-2, atol=5e-2)

    # Force a multi-tile grid (TB < B) to exercise the pipelined, weight-resident path.
    out_tiled = jax.block_until_ready(
        hyper_fourier_forward(x, freq_weights, phase_shift, max_rows_per_tile=32))
    np.testing.assert_allclose(np.asarray(out_tiled), np.asarray(ref), rtol=5e-2, atol=5e-2)

    print("KERNEL_OK")
</pallas_src>

<mosaic_0001>
module attributes {stable_mosaic.version = 11 : i64} {
  func.func @hyper_fourier_kernel(%arg0: i32, %arg1: memref<64x16xbf16, #tpu.memory_space<vmem>>, %arg2: memref<16x256xbf16, #tpu.memory_space<vmem>>, %arg3: memref<256x128xbf16, #tpu.memory_space<vmem>>, %arg4: memref<64x128xf32, #tpu.memory_space<vmem>>, %arg5: memref<64x128xf32, #tpu.memory_space<vmem>>, %arg6: memref<64x128xf32, #tpu.memory_space<vmem>>) attributes {dimension_semantics = [#tpu.dimension_semantics<parallel>], iteration_bounds = array<i64: 1>, scalar_prefetch = 0 : i64, scratch_operands = 0 : i64, tpu.core_type = #tpu.core_type<tc>, window_params = [{transform_indices = @transform_0, window_bounds = array<i64: 64, 16>}, {pipeline_mode = #tpu.pipeline_mode<synchronous>, transform_indices = @transform_1, window_bounds = array<i64: 16, 256>}, {pipeline_mode = #tpu.pipeline_mode<synchronous>, transform_indices = @transform_2, window_bounds = array<i64: 256, 128>}, {pipeline_mode = #tpu.pipeline_mode<synchronous>, transform_indices = @transform_3, window_bounds = array<i64: 64, 128>}, {pipeline_mode = #tpu.pipeline_mode<synchronous>, transform_indices = @transform_4, window_bounds = array<i64: 64, 128>}, {transform_indices = @transform_5, window_bounds = array<i64: 64, 128>}]} {
    %c0 = arith.constant 0 : index
    %c0_0 = arith.constant 0 : index
    %0 = vector.load %arg1[%c0, %c0_0] : memref<64x16xbf16, #tpu.memory_space<vmem>>, vector<64x16xbf16>
    %c0_1 = arith.constant 0 : index
    %c0_2 = arith.constant 0 : index
    %1 = vector.load %arg2[%c0_1, %c0_2] : memref<16x256xbf16, #tpu.memory_space<vmem>>, vector<16x256xbf16>
    %cst = arith.constant dense<0.000000e+00> : vector<64x256xf32>
    %2 = tpu.matmul %0, %1, %cst {dimension_numbers = #tpu.dot_dimension_numbers<[1], [0], [0], [1], [0, 0, 1, 1], [], []>} : vector<64x16xbf16>, vector<16x256xbf16>, vector<64x256xf32> -> vector<64x256xf32>
    %3 = vector.extract_strided_slice %2 {offsets = [0, 0], sizes = [64, 128], strides = [1, 1]} : vector<64x256xf32> to vector<64x128xf32>
    %4 = vector.extract_strided_slice %2 {offsets = [0, 128], sizes = [64, 128], strides = [1, 1]} : vector<64x256xf32> to vector<64x128xf32>
    %c0_3 = arith.constant 0 : index
    %c0_4 = arith.constant 0 : index
    %5 = vector.load %arg4[%c0_3, %c0_4] : memref<64x128xf32, #tpu.memory_space<vmem>>, vector<64x128xf32>
    %c0_5 = arith.constant 0 : index
    %c0_6 = arith.constant 0 : index
    %6 = vector.load %arg5[%c0_5, %c0_6] : memref<64x128xf32, #tpu.memory_space<vmem>>, vector<64x128xf32>
    %7 = arith.mulf %3, %5 : vector<64x128xf32>
    %8 = arith.mulf %4, %6 : vector<64x128xf32>
    %9 = arith.subf %7, %8 : vector<64x128xf32>
    %10 = arith.mulf %3, %6 : vector<64x128xf32>
    %11 = arith.mulf %4, %5 : vector<64x128xf32>
    %12 = arith.addf %10, %11 : vector<64x128xf32>
    %13 = tpu.concatenate %9, %12 in 1 : vector<64x128xf32>, vector<64x128xf32> -> vector<64x256xf32>
    %14 = arith.truncf %13 : vector<64x256xf32> to vector<64x256xbf16>
    %c0_7 = arith.constant 0 : index
    %c0_8 = arith.constant 0 : index
    %15 = vector.load %arg3[%c0_7, %c0_8] : memref<256x128xbf16, #tpu.memory_space<vmem>>, vector<256x128xbf16>
    %cst_9 = arith.constant dense<0.000000e+00> : vector<64x128xf32>
    %16 = tpu.matmul %14, %15, %cst_9 {dimension_numbers = #tpu.dot_dimension_numbers<[1], [0], [0], [1], [0, 0, 1, 1], [], []>} : vector<64x256xbf16>, vector<256x128xbf16>, vector<64x128xf32> -> vector<64x128xf32>
    %c0_10 = arith.constant 0 : index
    %c0_11 = arith.constant 0 : index
    %17 = vector.load %arg6[%c0_10, %c0_11] : memref<64x128xf32, #tpu.memory_space<vmem>>, vector<64x128xf32>
    tpu.vector_store %arg6[%c0_10, %c0_11], %16 {strides = array<i32>} : memref<64x128xf32, #tpu.memory_space<vmem>>, vector<64x128xf32>,
    return
  }
  func.func @transform_0(%arg0: i32) -> (i32, i32) {
    %c0_i32 = arith.constant 0 : i32
    %c0_i32_0 = arith.constant 0 : i32
    return %arg0, %c0_i32 : i32, i32
  }
  func.func @transform_1(%arg0: i32) -> (i32, i32) {
    %c0_i32 = arith.constant 0 : i32
    %c0_i32_0 = arith.constant 0 : i32
    %c0_i32_1 = arith.constant 0 : i32
    return %c0_i32, %c0_i32_0 : i32, i32
  }
  func.func @transform_2(%arg0: i32) -> (i32, i32) {
    %c0_i32 = arith.constant 0 : i32
    %c0_i32_0 = arith.constant 0 : i32
    %c0_i32_1 = arith.constant 0 : i32
    return %c0_i32, %c0_i32_0 : i32, i32
  }
  func.func @transform_3(%arg0: i32) -> (i32, i32) {
    %c0_i32 = arith.constant 0 : i32
    %c0_i32_0 = arith.constant 0 : i32
    %c0_i32_1 = arith.constant 0 : i32
    return %c0_i32, %c0_i32_0 : i32, i32
  }
  func.func @transform_4(%arg0: i32) -> (i32, i32) {
    %c0_i32 = arith.constant 0 : i32
    %c0_i32_0 = arith.constant 0 : i32
    %c0_i32_1 = arith.constant 0 : i32
    return %c0_i32, %c0_i32_0 : i32, i32
  }
  func.func @transform_5(%arg0: i32) -> (i32, i32) {
    %c0_i32 = arith.constant 0 : i32
    %c0_i32_0 = arith.constant 0 : i32
    return %arg0, %c0_i32 : i32, i32
  }
}

</mosaic_0001>

<bundles_post_ra>
// kernel: tpu_custom_call.1
= control target key start
LH: loop header
LB: loop body
LE: loop exit
PB: predicated region body
PF: predicated region fallthrough
CT: control target
= control target key end

     0   :  { %10 = vsyncpa [#allocation3], 0  ;;  %s762_s0 = inlined_call_operand.vmem [shape: bf16[64,16], index: 0, kind: input, shape index: {}]   ;;  %s763_s1 = inlined_call_operand.vmem [shape: bf16[16,256], index: 1, kind: input, shape index: {}]   ;;  %s764_s2 = inlined_call_operand.hbm [shape: bf16[256,128], index: 2, kind: input, shape index: {}]   ;;  %s765_s3 = inlined_call_operand.hbm [shape: f32[64,128], index: 3, kind: input, shape index: {}]   ;;  %s766_s4 = inlined_call_operand.hbm [shape: f32[64,128], index: 4, kind: input, shape index: {}]   ;;  %s767_s5 = inlined_call_operand.hbm [shape: f32[64,128], index: 5, kind: output, shape index: {}]  }
   0x1   :  { %11 = vsyncpa [#allocation6], 0 }
   0x2   :  { %12 = vsyncpa [#allocation4], 0  ;;  %s680_s18 = smov [#allocation5]  }
   0x3   :  { %s34_s19 = sshll.u32 %s680_s18, 4  ;;  %s35_s19 = int_to_ptr.vmem [resolvable:$true] %s34_s19 }
   0x4   :  { %s602_s20 = scalar_lea.vmem %s35_s19, 1024  ;;  %p607_p1 = scmp.lt.s32.totalorder %s35_s19, %s35_s19 }
   0x5   :  { %p603_p0 = scmp.ne.s32.totalorder %s35_s19, %s602_s20  ;;  %p608_p2 = scmp.lt.s32.totalorder %s602_s20, %s602_s20 }
   0x7   :  { %p609_p3 = por %p608_p2, %p607_p1 }
   0x9   :  { %p610_p4 = pnand %p609_p3, %p603_p0 }
   0xb   :  { %613 = shalt.err (!%p610_p4)
}
   0xc   :  { %s681_s21 = smov 128   ;;  %s682_s22 = smov 8  }
   0xd   :  { %40 = dma.hbm_to_vmem [thread:$0]  %s765_s3, 1024, %s35_s19, [#allocation6], %s681_s21, %s681_s21, %s682_s22  }
   0xe   :  { %s683_s25 = smov [#allocation2]  }
   0xf   :  { %s22_s26 = sshll.u32 %s683_s25, 4  ;;  %s23_s26 = int_to_ptr.vmem [resolvable:$true] %s22_s26 }
  0x10   :  { %s622_s27 = scalar_lea.vmem %s23_s26, 2048  ;;  %p627_p6 = scmp.lt.s32.totalorder %s23_s26, %s23_s26 }
  0x11   :  { %p623_p5 = scmp.ne.s32.totalorder %s23_s26, %s622_s27  ;;  %p628_p7 = scmp.lt.s32.totalorder %s622_s27, %s622_s27 }
  0x13   :  { %p629_p8 = por %p628_p7, %p627_p6 }
  0x15   :  { %p630_p9 = pnand %p629_p8, %p623_p5 }
  0x17   :  { %633 = shalt.err (!%p630_p9)
}
  0x18   :  { %s684_s28 = smov 64   ;;  %s685_s29 = smov 4  }
  0x19   :  { %28 = dma.hbm_to_vmem [thread:$0]  %s764_s2, 2048, %s23_s26, [#allocation3], %s684_s28, %s684_s28, %s685_s29  }
  0x1a   :  { %s686_s7 = smov [#allocation7]  }
  0x1b   :  { %s46_s8 = sshll.u32 %s686_s7, 4  ;;  %s47_s8 = int_to_ptr.vmem [resolvable:$true] %s46_s8 }
  0x1c   :  { %s642_s3 = scalar_lea.vmem %s47_s8, 1024  ;;  %p647_p11 = scmp.lt.s32.totalorder %s47_s8, %s47_s8 }
  0x1d   :  { %p643_p10 = scmp.ne.s32.totalorder %s47_s8, %s642_s3  ;;  %p648_p12 = scmp.lt.s32.totalorder %s642_s3, %s642_s3 }
  0x1f   :  { %p649_p13 = por %p648_p12, %p647_p11 }
  0x21   :  { %p650_p0 = pnand %p649_p13, %p643_p10 }
  0x23   :  { %653 = shalt.err (!%p650_p0)
}
  0x24   :  { %52 = dma.hbm_to_vmem [thread:$0]  %s766_s4, 1024, %s47_s8, [#allocation6], %s681_s21, %s681_s21, %s682_s22  }
  0x25   :  { %674 = dma.done.wait [#allocation3], 2048  }
  0x26   :  { %675 = vsyncadd [#allocation3], 4294965248 }
  0x27   :  { %676 = dma.done.wait [#allocation6], 2048  }
  0x28   :  { %677 = vsyncadd [#allocation6], 4294965248  ;;  %v687_v0 = vmov 0   ;;  %v571_v1 = vld [vmem:[%s763_s1 + $0x4] ss:$8 sps:$4 sm:$0xff]   ;;  %vm103_vm0 = vcmask 130048  }
  0x29   :  { %148 = vmatprep.mubr.bf16.mxu0 %v687_v0  ;;  %v573_v2 = vld [vmem:[%s763_s1] ss:$8 sps:$4 sm:$0xff]   ;;  %130 = vmatprep.subr.bf16.mxu0 %v571_v1  ;;  %v578_v4 = vld [vmem:[#allocation2 + $0x78] sm:$0xff]   ;;  %v580_v7 = vld [vmem:[#allocation2 + $0x70] sm:$0xff]  }
  0x2a   :  { %v574_v3 = vld [vmem:[%s762_s0] sm:$0xff]   ;;  %131 = vmatpush1.bf16.msra.mxu0 %v573_v2  ;;  %v579_v5 = vld [vmem:[#allocation2 + $0x38] sm:$0xff]   ;;  %v575_v6 = vld [vmem:[%s762_s0 + $0x8] sm:$0xff]   ;;  %546 = vmatprep.subr.bf16.mxu1 %v578_v4 }
  0x2b   :  { %506 = vmatprep.subr.bf16.mxu0 %v578_v4  ;;  %v581_v8 = vld [vmem:[#allocation2 + $0x30] sm:$0xff]   ;;  %554 = vmatpush3.bf16.msra.mxu1 %v579_v5  ;;  %v582_v9 = vld [vmem:[#allocation2 + $0x68] sm:$0xff]   ;;  %v584_v11 = vld [vmem:[#allocation2 + $0x60] sm:$0xff]  }
  0x2c   :  { %547 = vmatprep.subr.bf16.mxu1 %v580_v7  ;;  %v583_v10 = vld [vmem:[#allocation2 + $0x28] sm:$0xff]   ;;  %v585_v12 = vld [vmem:[#allocation2 + $0x20] sm:$0xff]   ;;  %v576_v13 = vld [vmem:[%s762_s0 + $0x10] sm:$0xff]  }
  0x2d   :  { %486 = vmatmul.mubr.msk.bf16.vlgmr.msra.gmra.mxu0 %vm103_vm0, %v574_v3  ;;  %v586_v14 = vld [vmem:[#allocation2 + $0x58] sm:$0xff]   ;;  %v588_v17 = vld [vmem:[#allocation2 + $0x50] sm:$0xff]   ;;  %v590_v19 = vld [vmem:[#allocation2 + $0x48] sm:$0xff]  }
  0x2e   :  { %158 = vmatprep.mubr.bf16.mxu0 %v687_v0  ;;  %507 = vmatpush3.bf16.msra.mxu0 %v579_v5  ;;  %v587_v15 = vld [vmem:[#allocation2 + $0x18] sm:$0xff]   ;;  %v589_v18 = vld [vmem:[#allocation2 + $0x10] sm:$0xff]   ;;  %v591_v20 = vld [vmem:[#allocation2 + $0x8] sm:$0xff]  }
  0x2f   :  { %508 = vmatprep.subr.bf16.mxu0 %v580_v7  ;;  %555 = vmatpush3.bf16.msra.mxu1 %v581_v8  ;;  %v577_v16 = vld [vmem:[%s762_s0 + $0x18] sm:$0xff]   ;;  %v592_v21 = vld [vmem:[#allocation2 + $0x40] sm:$0xff]   ;;  %v190_v28 = vld [vmem:[#allocation5 + $0x8] sm:$0xff]  ;;  %s688_s0 = smov [#allocation8]  }
  0x30   :  { %548 = vmatprep.subr.bf16.mxu1 %v582_v9  ;;  %v593_v22 = vld [vmem:[#allocation2] sm:$0xff]   ;;  %v198_v29 = vld [vmem:[#allocation7 + $0x8] sm:$0xff]  ;;  %v191_v46 = vld [vmem:[#allocation5 + $0x10] sm:$0xff]  ;;  %s467_s20 = sshll.u32 %s688_s0, 4  ;;  %s468_s20 = int_to_ptr.vmem [resolvable:$true] %s467_s20 }
  0x31   :  { %v189_v25 = vld [vmem:[#allocation5] sm:$0xff]  ;;  %v199_v47 = vld [vmem:[#allocation7 + $0x10] sm:$0xff]  ;;  %v192_v50 = vld [vmem:[#allocation5 + $0x18] sm:$0xff]  ;;  %s654_s23 = scalar_lea.vmem %s468_s20, 1024  ;;  %p659_p2 = scmp.lt.s32.totalorder %s468_s20, %s468_s20 }
  0x32   :  { %509 = vmatpush3.bf16.msra.mxu0 %v581_v8  ;;  %v197_v26 = vld [vmem:[#allocation7] sm:$0xff]  ;;  %v200_v51 = vld [vmem:[#allocation7 + $0x18] sm:$0xff]  ;;  %v194_v8 = vld [vmem:[#allocation5 + $0x28] sm:$0xff]  ;;  %p655_p1 = scmp.ne.s32.totalorder %s468_s20, %s654_s23  ;;  %p660_p3 = scmp.lt.s32.totalorder %s654_s23, %s654_s23 }
  0x33   :  { %510 = vmatprep.subr.bf16.mxu0 %v582_v9  ;;  %556 = vmatpush3.bf16.msra.mxu1 %v583_v10  ;;  %v193_v3 = vld [vmem:[#allocation5 + $0x20] sm:$0xff]  ;;  %v202_v9 = vld [vmem:[#allocation7 + $0x28] sm:$0xff] }
  0x34   :  { %549 = vmatprep.subr.bf16.mxu1 %v584_v11  ;;  %v201_v4 = vld [vmem:[#allocation7 + $0x20] sm:$0xff]  ;;  %p661_p4 = por %p660_p3, %p659_p2 }
  0x35   :  { %487 = vmatmul.mubr.msk.bf16.gmra.mxu0 %vm103_vm0, %v575_v6 }
  0x36   :  { %168 = vmatprep.mubr.bf16.mxu0 %v687_v0  ;;  %511 = vmatpush3.bf16.msra.mxu0 %v583_v10  ;;  %p662_p5 = pnand %p661_p4, %p655_p1 }
  0x37   :  { %512 = vmatprep.subr.bf16.mxu0 %v584_v11  ;;  %557 = vmatpush3.bf16.msra.mxu1 %v585_v12 }
  0x38   :  { %550 = vmatprep.subr.bf16.mxu1 %v586_v14 }
  0x3a   :  { %513 = vmatpush3.bf16.msra.mxu0 %v585_v12 }
  0x3b   :  { %514 = vmatprep.subr.bf16.mxu0 %v586_v14  ;;  %558 = vmatpush3.bf16.msra.mxu1 %v587_v15 }
  0x3c   :  { %551 = vmatprep.subr.bf16.mxu1 %v588_v17 }
  0x3d   :  { %488 = vmatmul.mubr.msk.bf16.gmra.mxu0 %vm103_vm0, %v576_v13 }
  0x3e   :  { %178 = vmatprep.mubr.bf16.mxu0 %v687_v0  ;;  %515 = vmatpush3.bf16.msra.mxu0 %v587_v15 }
  0x3f   :  { %516 = vmatprep.subr.bf16.mxu0 %v588_v17  ;;  %559 = vmatpush3.bf16.msra.mxu1 %v589_v18 }
  0x40   :  { %552 = vmatprep.subr.bf16.mxu1 %v590_v19 }
  0x42   :  { %517 = vmatpush3.bf16.msra.mxu0 %v589_v18 }
  0x43   :  { %518 = vmatprep.subr.bf16.mxu0 %v590_v19  ;;  %560 = vmatpush3.bf16.msra.mxu1 %v591_v20 }
  0x44   :  { %553 = vmatprep.subr.bf16.mxu1 %v592_v21 }
  0x45   :  { %489 = vmatmul.mubr.msk.bf16.gmra.mxu0 %vm103_vm0, %v577_v16 }
  0x46   :  { %519 = vmatpush3.bf16.msra.mxu0 %v591_v20 }
  0x47   :  { %520 = vmatprep.subr.bf16.mxu0 %v592_v21  ;;  %561 = vmatpush3.bf16.msra.mxu1 %v593_v22 }
  0x4a   :  { %521 = vmatpush3.bf16.msra.mxu0 %v593_v22 }
  0xed   :  { %v150_v23 = vpop.f32.mrf.mxu0 }
  0xee   :  { %v205_v32 = vmul.f32 %v189_v25, %v150_v23  ;;  %v229_v33 = vmul.f32 %v197_v26, %v150_v23 }
  0xef   :  { %v152_v24 = vpop.f32.mrf.mxu0 }
  0xf0   :  { %v213_v30 = vmul.f32 %v197_v26, %v152_v24  ;;  %v237_v31 = vmul.f32 %v189_v25, %v152_v24  ;;  %v195_v25 = vld [vmem:[#allocation5 + $0x30] sm:$0xff] }
  0xf1   :  { %v154_v27 = vpop.f32.mrf.mxu0  ;;  %v203_v26 = vld [vmem:[#allocation7 + $0x30] sm:$0xff] }
  0xf2   :  { %v206_v35 = vmul.f32 %v190_v28, %v154_v27  ;;  %v230_v36 = vmul.f32 %v198_v29, %v154_v27  ;;  %v221_v40 = vsub.f32 %v205_v32, %v213_v30  ;;  %v245_v41 = vadd.f32 %v237_v31, %v229_v33  ;;  %v196_v30 = vld [vmem:[#allocation5 + $0x38] sm:$0xff] }
  0xf3   :  { %v156_v34 = vpop.f32.mrf.mxu0  ;;  %v204_v31 = vld [vmem:[#allocation7 + $0x38] sm:$0xff] }
  0xf4   :  { %v214_v37 = vmul.f32 %v198_v29, %v156_v34  ;;  %v238_v38 = vmul.f32 %v190_v28, %v156_v34 }
  0xf5   :  { %v160_v39 = vpop.f32.mrf.mxu0 }
  0xf6   :  { %v222_v42 = vsub.f32 %v206_v35, %v214_v37  ;;  %v246_v43 = vadd.f32 %v238_v38, %v230_v36  ;;  %v207_v54 = vmul.f32 %v191_v46, %v160_v39  ;;  %v231_v55 = vmul.f32 %v199_v47, %v160_v39 }
  0xf7   :  { %v162_v44 = vpop.f32.mrf.mxu0 }
  0xf8   :  { %v253_v45 = vpack.c.bf16 %v222_v42, %v221_v40  ;;  %v254_v48 = vpack.c.bf16 %v246_v43, %v245_v41  ;;  %v215_v52 = vmul.f32 %v199_v47, %v162_v44  ;;  %v239_v53 = vmul.f32 %v191_v46, %v162_v44 }
  0xf9   :  { %v164_v49 = vpop.f32.mrf.mxu0 }
  0xfa   :  { %421 = vmatprep.mubr.bf16.mxu0 %v254_v48  ;;  %v208_v57 = vmul.f32 %v192_v50, %v164_v49  ;;  %v232_v58 = vmul.f32 %v200_v51, %v164_v49  ;;  %v223_v62 = vsub.f32 %v207_v54, %v215_v52  ;;  %v247_v0 = vadd.f32 %v239_v53, %v231_v55 }
  0xfb   :  { %v166_v56 = vpop.f32.mrf.mxu0  ;;  %422 = vmatmul.mubr.bf16.vlgmr.msra.gmra.mxu0 %v253_v45 }
  0xfc   :  { %v216_v59 = vmul.f32 %v200_v51, %v166_v56  ;;  %v240_v60 = vmul.f32 %v192_v50, %v166_v56 }
  0xfd   :  { %v170_v61 = vpop.f32.mrf.mxu0 }
  0xfe   :  { %v224_v63 = vsub.f32 %v208_v57, %v216_v59  ;;  %v248_v1 = vadd.f32 %v240_v60, %v232_v58  ;;  %v209_v12 = vmul.f32 %v193_v3, %v170_v61  ;;  %v233_v13 = vmul.f32 %v201_v4, %v170_v61 }
  0xff   :  { %v172_v2 = vpop.f32.mrf.mxu0 }
 0x100   :  { %v256_v5 = vpack.c.bf16 %v248_v1, %v247_v0  ;;  %v255_v6 = vpack.c.bf16 %v224_v63, %v223_v62  ;;  %v217_v10 = vmul.f32 %v201_v4, %v172_v2  ;;  %v241_v11 = vmul.f32 %v193_v3, %v172_v2 }
 0x101   :  { %v174_v7 = vpop.f32.mrf.mxu0 }
 0x102   :  { %429 = vmatprep.mubr.bf16.mxu1 %v256_v5  ;;  %v210_v15 = vmul.f32 %v194_v8, %v174_v7  ;;  %v234_v16 = vmul.f32 %v202_v9, %v174_v7  ;;  %v225_v20 = vsub.f32 %v209_v12, %v217_v10  ;;  %v249_v21 = vadd.f32 %v241_v11, %v233_v13 }
 0x103   :  { %v176_v14 = vpop.f32.mrf.mxu0  ;;  %430 = vmatmul.mubr.bf16.vlgmr.msra.gmra.mxu1 %v255_v6 }
 0x104   :  { %v218_v17 = vmul.f32 %v202_v9, %v176_v14  ;;  %v242_v18 = vmul.f32 %v194_v8, %v176_v14 }
 0x105   :  { %v180_v19 = vpop.f32.mrf.mxu0 }
 0x106   :  { %v226_v22 = vsub.f32 %v210_v15, %v218_v17  ;;  %v250_v23 = vadd.f32 %v242_v18, %v234_v16  ;;  %v211_v34 = vmul.f32 %v195_v25, %v180_v19  ;;  %v235_v35 = vmul.f32 %v203_v26, %v180_v19 }
 0x107   :  { %v182_v24 = vpop.f32.mrf.mxu0 }
 0x108   :  { %v258_v27 = vpack.c.bf16 %v250_v23, %v249_v21  ;;  %v257_v28 = vpack.c.bf16 %v226_v22, %v225_v20  ;;  %v219_v32 = vmul.f32 %v203_v26, %v182_v24  ;;  %v243_v33 = vmul.f32 %v195_v25, %v182_v24 }
 0x109   :  { %v184_v29 = vpop.f32.mrf.mxu0 }
 0x10a   :  { %437 = vmatprep.mubr.bf16.mxu1 %v258_v27  ;;  %v212_v37 = vmul.f32 %v196_v30, %v184_v29  ;;  %v236_v38 = vmul.f32 %v204_v31, %v184_v29  ;;  %v227_v41 = vsub.f32 %v211_v34, %v219_v32  ;;  %v251_v42 = vadd.f32 %v243_v33, %v235_v35 }
 0x10b   :  { %v186_v36 = vpop.f32.mrf.mxu0  ;;  %438 = vmatmul.mubr.bf16.gmra.mxu1 %v257_v28 }
 0x10c   :  { %v220_v39 = vmul.f32 %v204_v31, %v186_v36  ;;  %v244_v40 = vmul.f32 %v196_v30, %v186_v36 }
 0x10e   :  { %v228_v43 = vsub.f32 %v212_v37, %v220_v39  ;;  %v252_v44 = vadd.f32 %v244_v40, %v236_v38 }
 0x110   :  { %v260_v45 = vpack.c.bf16 %v252_v44, %v251_v42  ;;  %v259_v46 = vpack.c.bf16 %v228_v43, %v227_v41 }
 0x112   :  { %445 = vmatprep.mubr.bf16.mxu1 %v260_v45 }
 0x113   :  { %446 = vmatmul.mubr.bf16.gmra.mxu1 %v259_v46 }
 0x1bb   :  { %v522_v47 = vpop.f32.mrf.mxu0 }
 0x1bd   :  { %v523_v48 = vpop.f32.mrf.mxu0 }
 0x1be   :  { %v524_v49 = vadd.f32 %v523_v48, %v522_v47 }
 0x1bf   :  { %v525_v50 = vpop.f32.mrf.mxu0 }
 0x1c0   :  { %454 = vst [vmem:[#allocation8] sm:$0xff] %v524_v49 }
 0x1c1   :  { %v526_v51 = vpop.f32.mrf.mxu0 }
 0x1c2   :  { %v527_v52 = vadd.f32 %v526_v51, %v525_v50 }
 0x1c3   :  { %v528_v53 = vpop.f32.mrf.mxu1 }
 0x1c4   :  { %455 = vst [vmem:[#allocation8 + $0x8] sm:$0xff] %v527_v52 }
 0x1c5   :  { %v529_v54 = vpop.f32.mrf.mxu1 }
 0x1c6   :  { %v530_v55 = vadd.f32 %v529_v54, %v528_v53 }
 0x1c7   :  { %v531_v56 = vpop.f32.mrf.mxu1 }
 0x1c8   :  { %456 = vst [vmem:[#allocation8 + $0x10] sm:$0xff] %v530_v55 }
 0x1c9   :  { %v532_v57 = vpop.f32.mrf.mxu1 }
 0x1ca   :  { %v533_v58 = vadd.f32 %v532_v57, %v531_v56 }
 0x1cb   :  { %v534_v59 = vpop.f32.mrf.mxu1 }
 0x1cc   :  { %457 = vst [vmem:[#allocation8 + $0x18] sm:$0xff] %v533_v58 }
 0x1cd   :  { %v535_v60 = vpop.f32.mrf.mxu1 }
 0x1ce   :  { %v536_v61 = vadd.f32 %v535_v60, %v534_v59 }
 0x1cf   :  { %v537_v62 = vpop.f32.mrf.mxu1 }
 0x1d0   :  { %458 = vst [vmem:[#allocation8 + $0x20] sm:$0xff] %v536_v61 }
 0x1d1   :  { %v538_v63 = vpop.f32.mrf.mxu1 }
 0x1d2   :  { %v539_v0 = vadd.f32 %v538_v63, %v537_v62 }
 0x1d3   :  { %v540_v1 = vpop.f32.mrf.mxu1 }
 0x1d4   :  { %459 = vst [vmem:[#allocation8 + $0x28] sm:$0xff] %v539_v0 }
 0x1d5   :  { %v541_v2 = vpop.f32.mrf.mxu1 }
 0x1d6   :  { %v542_v3 = vadd.f32 %v541_v2, %v540_v1 }
 0x1d7   :  { %v543_v4 = vpop.f32.mrf.mxu1 }
 0x1d8   :  { %460 = vst [vmem:[#allocation8 + $0x30] sm:$0xff] %v542_v3 }
 0x1d9   :  { %v544_v5 = vpop.f32.mrf.mxu1 }
 0x1da   :  { %v545_v6 = vadd.f32 %v544_v5, %v543_v4 }
 0x1dc   :  { %461 = vst [vmem:[#allocation8 + $0x38] sm:$0xff] %v545_v6 }
 0x1dd   :  { %665 = shalt.err (!%p662_p5)
}
 0x1de   :  { %473 = dma.vmem_to_hbm [thread:$0]  %s468_s20, 1024, %s767_s5, [#allocation4], %s681_s21, %s681_s21, %s682_s22  }
 0x1df   :  { %678 = dma.done.wait [#allocation4], 1024  }
 0x1e0   :  { %679 = vsyncadd [#allocation4], 4294966272 }
 0x1e1   :  { %477 = vsyncpa [#allocation3], 1 }
 0x1e2   :  { %478 = vsyncpa [#allocation6], 1 }
 0x1e3   :  { %479 = vsyncpa [#allocation4], 1 }

</bundles_post_ra>
